<compile_context>
chip_gen: v5e
topology: v5e:2x2
jax: 0.10.0
libtpu: 0.0.40
codegen_flags: <defaults>
</compile_context>

<pallas_src>
import jax
import jax.numpy as jnp
from jax import lax
from jax.experimental import pallas as pl
from jax.experimental.pallas import tpu as pltpu


# ------------------------------ small helpers ------------------------------ #
def _round_up(n, m):
    return ((n + m - 1) // m) * m


def _vmem_limit(need_bytes):
    # Cap at 48 MiB so the request also fits v7x's 64 MiB/TC physical VMEM with
    # headroom; v5e/v6e have 128 MiB so the cap is always safe.
    return int(min(48 << 20, max(16 << 20, need_bytes + (2 << 20))))


# ------------------------------ Pallas kernels ------------------------------ #
def _make_fused_kernel(hw):
    """Single-pass kernel: block = (bt, C, HW) with HW = full spatial extent."""
    inv_hw = 1.0 / float(hw)

    def kernel(x_ref, w_ref, o_ref):
        xb = x_ref[...]                                   # (bt, C, HW), model dtype
        # f32 accumulation without materializing a full-tile f32 copy; Mosaic
        # masks the physical lane padding when HW is not a multiple of 128.
        s = jnp.sum(xb, axis=-1, dtype=jnp.float32)       # (bt, C)
        mx = jnp.max(xb, axis=-1).astype(jnp.float32)     # (bt, C)
        d = jnp.concatenate([s * inv_hw, mx], axis=1)     # (bt, 2C)
        z = jnp.dot(d, w_ref[...],
                    preferred_element_type=jnp.float32)   # (bt, C): one matmul/step
        gate = jax.nn.sigmoid(z).astype(xb.dtype)         # (bt, C)
        # Channel gate broadcasts along lanes; single store stream, lane dense.
        o_ref[...] = xb * gate[:, :, None]

    return kernel


def _make_reduce_kernel(hw_valid, hw_t):
    """Two-phase pass 1: accumulate sum/max over HW tiles, emit the gate."""
    inv_hw = 1.0 / float(hw_valid)
    partial = (hw_valid % hw_t) != 0

    def kernel(x_ref, w_ref, g_ref, sum_sc, max_sc):
        j = pl.program_id(1)

        @pl.when(j == 0)
        def _():
            sum_sc[...] = jnp.zeros_like(sum_sc)
            max_sc[...] = jnp.full_like(max_sc, -jnp.inf)

        xb = x_ref[...]                                   # (1, C, hw_t)
        if partial:
            # Last spatial tile runs past HW; tail lanes hold unspecified data,
            # so mask both reductions against the global element index.
            lane = lax.broadcasted_iota(jnp.int32, xb.shape, 2)
            valid = (j * hw_t + lane) < hw_valid
            xs = jnp.where(valid, xb, jnp.zeros((), xb.dtype))
            xm = jnp.where(valid, xb, jnp.asarray(-jnp.inf, xb.dtype))
        else:
            xs, xm = xb, xb

        sum_sc[...] += jnp.sum(xs, axis=-1, dtype=jnp.float32)       # (1, C)
        max_sc[...] = jnp.maximum(max_sc[...],
                                  jnp.max(xm, axis=-1).astype(jnp.float32))

        @pl.when(j == pl.num_programs(1) - 1)
        def _():
            d = jnp.concatenate([sum_sc[...] * inv_hw, max_sc[...]], axis=1)  # (1, 2C)
            z = jnp.dot(d, w_ref[...],
                        preferred_element_type=jnp.float32)                   # (1, C)
            g_ref[...] = jax.nn.sigmoid(z).astype(g_ref.dtype)[:, :, None]

    return kernel


def _scale_kernel(x_ref, g_ref, o_ref):
    """Two-phase pass 2: out = x * gate (gate broadcasts along lanes)."""
    o_ref[...] = x_ref[...] * g_ref[...]


# ------------------------- parameter / glue setup --------------------------- #
def _conv_band_T(w, channels):
    """PyTorch Conv1d weight (1, 2, k), padding=(k-1)//2 -> (2, C, C) matrices
    M[j, c_out, c_in] = w[0, j, c_in - c_out + pad] (zero outside taps)."""
    k = w.shape[-1]
    pad = (k - 1) // 2
    c_out = jnp.arange(channels)[:, None]
    c_in = jnp.arange(channels)[None, :]
    t = c_in - c_out + pad
    valid = (t >= 0) & (t < k)
    t_clamped = jnp.clip(t, 0, k - 1)
    taps = w[0][:, t_clamped]                             # (2, C, C)
    return jnp.where(valid[None, :, :], taps, 0.0)


def _meca_two_phase(x3, w_mat, *, target_block_bytes):
    """Reduce pass (sum/max -> gate) + scale pass, spatially tiled. Used when a
    single-batch full-HW block no longer fits the VMEM budget (binds earliest
    on v7x's 64 MiB/TC)."""
    B, C, HW = x3.shape
    dsize = jnp.dtype(x3.dtype).itemsize
    cp = _round_up(C, 8)
    hwp = _round_up(HW, 128)
    hw_t = max(128, (int(target_block_bytes) // (cp * 128 * dsize)) * 128)
    hw_t = min(hw_t, hwp)
    n_hw = pl.cdiv(HW, hw_t)

    block_bytes = cp * hw_t * dsize
    w_bytes = int(w_mat.size) * 4
    vmem_limit = _vmem_limit(4 * block_bytes + 2 * w_bytes)

    gate = pl.pallas_call(
        _make_reduce_kernel(HW, hw_t),
        out_shape=jax.ShapeDtypeStruct((B, C, 1), x3.dtype),
        grid=(B, n_hw),
        in_specs=[
            pl.BlockSpec((1, C, hw_t), lambda b, j: (b, 0, j)),
            pl.BlockSpec((2 * C, C), lambda b, j: (0, 0)),
        ],
        out_specs=pl.BlockSpec((1, C, 1), lambda b, j: (b, 0, 0)),
        scratch_shapes=[pltpu.VMEM((1, C), jnp.float32),
                        pltpu.VMEM((1, C), jnp.float32)],
        compiler_params=pltpu.CompilerParams(
            dimension_semantics=("parallel", "arbitrary"),
            vmem_limit_bytes=vmem_limit),
    )(x3, w_mat)

    out = pl.pallas_call(
        _scale_kernel,
        out_shape=jax.ShapeDtypeStruct((B, C, HW), x3.dtype),
        grid=(B, n_hw),
        in_specs=[
            pl.BlockSpec((1, C, hw_t), lambda b, j: (b, 0, j)),
            pl.BlockSpec((1, C, 1), lambda b, j: (b, 0, 0)),
        ],
        out_specs=pl.BlockSpec((1, C, hw_t), lambda b, j: (b, 0, j)),
        compiler_params=pltpu.CompilerParams(
            dimension_semantics=("parallel", "parallel"),
            vmem_limit_bytes=vmem_limit),
    )(x3, gate)
    return out


def meca_forward(x, w1, w2, w3, *, target_block_bytes=4 << 20,
                 max_block_bytes=8 << 20, max_bt=8, min_grid_steps=8):
    B, C, H, W = x.shape
    HW = H * W
    dsize = jnp.dtype(x.dtype).itemsize

    # Fold the three Conv1d's (both descriptor channels) into ONE (2C, C)
    # matrix acting on the stacked [avg | max] row descriptor.
    M = _conv_band_T(w1, C) + _conv_band_T(w2, C) + _conv_band_T(w3, C)   # (2, C, C)
    w_mat = jnp.concatenate([M[0], M[1]], axis=1).T.astype(jnp.float32)   # (2C, C)

    x3 = x.reshape(B, C, HW)      # free reshape; no pad / slice HBM round trips

    cp = _round_up(C, 8)
    hwp = _round_up(HW, 128)
    per_b = cp * hwp * dsize      # VMEM footprint of one batch element's block
    w_bytes = int(w_mat.size) * 4

    if per_b > max_block_bytes:
        out = _meca_two_phase(x3, w_mat, target_block_bytes=target_block_bytes)
        return out.reshape(B, C, H, W)

    # Fused single-pass path (one read + one write of x). Pack bt batch
    # elements per grid step only when it keeps the grid long enough to
    # software-pipeline (and shard across v7x's two TensorCores).
    bt = 1
    for d in range(2, min(B, max_bt) + 1):
        if B % d == 0 and d * per_b <= target_block_bytes and B // d >= min_grid_steps:
            bt = d

    block_bytes = bt * per_b
    # Note: the (2C, C) weight is grid-invariant; it still gets the default
    # double buffer (a few KiB here) — single-buffering it is a possible
    # further saving at very large C.
    vmem_limit = _vmem_limit(4 * block_bytes + 2 * w_bytes)

    cost = pl.CostEstimate(
        flops=3 * B * C * HW + 2 * B * (2 * C) * C,
        transcendentals=B * C,
        bytes_accessed=2 * B * C * HW * dsize + w_bytes,
    )

    out = pl.pallas_call(
        _make_fused_kernel(HW),
        out_shape=jax.ShapeDtypeStruct((B, C, HW), x.dtype),
        grid=(B // bt,),
        in_specs=[
            pl.BlockSpec((bt, C, HW), lambda g: (g, 0, 0)),
            pl.BlockSpec((2 * C, C), lambda g: (0, 0)),
        ],
        out_specs=pl.BlockSpec((bt, C, HW), lambda g: (g, 0, 0)),
        compiler_params=pltpu.CompilerParams(
            dimension_semantics=("parallel",),
            vmem_limit_bytes=vmem_limit),
        cost_estimate=cost,
    )(x3, w_mat)
    return out.reshape(B, C, H, W)


# ----------------------------- pure-JAX reference --------------------------- #
def meca_reference(x, w1, w2, w3):
    avg = jnp.mean(x, axis=(2, 3))                        # (B, C)
    mx = jnp.max(x, axis=(2, 3))                          # (B, C)
    y = jnp.stack([avg, mx], axis=1)                      # (B, 2, C)

    def conv1d(y, w):
        k = w.shape[-1]
        pad = (k - 1) // 2
        return lax.conv_general_dilated(
            y, w, window_strides=(1,), padding=[(pad, pad)],
            dimension_numbers=("NCH", "OIH", "NCH"))

    z = conv1d(y, w1) + conv1d(y, w2) + conv1d(y, w3)     # (B, 1, C)
    gate = jax.nn.sigmoid(z)[:, 0, :]                     # (B, C)
    return x * gate[:, :, None, None]


# ----------------------------------- main ------------------------------------ #
if __name__ == "__main__":
    B, C, H, W = 2, 16, 16, 16    # channel=16 -> conv kernel sizes [9, 5, 3] (odd)

    key = jax.random.PRNGKey(0)
    kx, k1, k2, k3 = jax.random.split(key, 4)

    x = jax.random.normal(kx, (B, C, H, W), dtype=jnp.float32)

    ks = [C // 2 + 1, C // 4 + 1, C // 8 + 1]             # [9, 5, 3]
    w1 = 0.1 * jax.random.normal(k1, (1, 2, ks[0]), dtype=jnp.float32)
    w2 = 0.1 * jax.random.normal(k2, (1, 2, ks[1]), dtype=jnp.float32)
    w3 = 0.1 * jax.random.normal(k3, (1, 2, ks[2]), dtype=jnp.float32)

    ref = meca_reference(x, w1, w2, w3)

    # 1) Fused single-pass path, f32 I/O.
    out = jax.block_until_ready(meca_forward(x, w1, w2, w3))
    assert out.shape == x.shape and out.dtype == x.dtype
    assert jnp.allclose(out, ref, atol=1e-5, rtol=1e-5), "f32 fused mismatch"

    # 2) Fused path, bf16 I/O (f32 descriptor accumulation in-kernel).
    outb = jax.block_until_ready(meca_forward(x.astype(jnp.bfloat16), w1, w2, w3))
    assert outb.dtype == jnp.bfloat16
    assert jnp.allclose(outb.astype(jnp.float32), ref, atol=6e-2, rtol=6e-2), \
        "bf16 fused mismatch"

    # 3) Two-phase (spatially tiled) path, forced via tiny block budget.
    out2 = jax.block_until_ready(
        meca_forward(x, w1, w2, w3, max_block_bytes=1, target_block_bytes=16 * 128 * 4))
    assert jnp.allclose(out2, ref, atol=3e-5, rtol=3e-5), "f32 two-phase mismatch"

    # 4) Unaligned spatial extent (HW = 144, not a multiple of 128):
    #    fused path (full-extent last block dim, no wrapper pad/slice) and
    #    two-phase path (partial last spatial tile, masked reductions).
    xu = jax.random.normal(kx, (B, C, 12, 12), dtype=jnp.float32)
    refu = meca_reference(xu, w1, w2, w3)
    outu = jax.block_until_ready(meca_forward(xu, w1, w2, w3))
    assert jnp.allclose(outu, refu, atol=1e-5, rtol=1e-5), "f32 fused (HW=144) mismatch"
    outu2 = jax.block_until_ready(
        meca_forward(xu, w1, w2, w3, max_block_bytes=1, target_block_bytes=16 * 128 * 4))
    assert jnp.allclose(outu2, refu, atol=3e-5, rtol=3e-5), "f32 two-phase (HW=144) mismatch"

    print("KERNEL_OK")
</pallas_src>

<mosaic_0001>
module attributes {stable_mosaic.version = 11 : i64} {
  func.func @kernel(%arg0: i32, %arg1: memref<1x16x256xf32, #tpu.memory_space<vmem>>, %arg2: memref<32x16xf32, #tpu.memory_space<vmem>>, %arg3: memref<1x16x256xf32, #tpu.memory_space<vmem>>) attributes {dimension_semantics = [#tpu.dimension_semantics<parallel>], iteration_bounds = array<i64: 2>, scalar_prefetch = 0 : i64, scratch_operands = 0 : i64, tpu.core_type = #tpu.core_type<tc>, window_params = [{transform_indices = @transform_0, window_bounds = array<i64: 1, 16, 256>}, {pipeline_mode = #tpu.pipeline_mode<synchronous>, transform_indices = @transform_1, window_bounds = array<i64: 32, 16>}, {transform_indices = @transform_2, window_bounds = array<i64: 1, 16, 256>}]} {
    %c0 = arith.constant 0 : index
    %c0_0 = arith.constant 0 : index
    %c0_1 = arith.constant 0 : index
    %0 = vector.load %arg1[%c0, %c0_0, %c0_1] : memref<1x16x256xf32, #tpu.memory_space<vmem>>, vector<1x16x256xf32>
    %cst = arith.constant dense<0.000000e+00> : vector<1x16xf32>
    %1 = vector.multi_reduction <add>, %0, %cst [2] : vector<1x16x256xf32> to vector<1x16xf32>
    %cst_2 = arith.constant dense<0xFF800000> : vector<1x16xf32>
    %2 = vector.multi_reduction <maximumf>, %0, %cst_2 [2] : vector<1x16x256xf32> to vector<1x16xf32>
    %cst_3 = arith.constant 3.906250e-03 : f32
    %3 = vector.broadcast %cst_3 : f32 to vector<1x16xf32>
    %4 = arith.mulf %1, %3 : vector<1x16xf32>
    %5 = tpu.concatenate %4, %2 in 1 : vector<1x16xf32>, vector<1x16xf32> -> vector<1x32xf32>
    %c0_4 = arith.constant 0 : index
    %c0_5 = arith.constant 0 : index
    %6 = vector.load %arg2[%c0_4, %c0_5] : memref<32x16xf32, #tpu.memory_space<vmem>>, vector<32x16xf32>
    %cst_6 = arith.constant dense<0.000000e+00> : vector<1x16xf32>
    %7 = tpu.matmul %5, %6, %cst_6 {dimension_numbers = #tpu.dot_dimension_numbers<[1], [0], [0], [1], [0, 0, 1, 1], [], []>} : vector<1x32xf32>, vector<32x16xf32>, vector<1x16xf32> -> vector<1x16xf32>
    %8 = arith.negf %7 : vector<1x16xf32>
    %9 = math.exp %8 : vector<1x16xf32>
    %cst_7 = arith.constant 1.000000e+00 : f32
    %10 = vector.broadcast %cst_7 : f32 to vector<1x16xf32>
    %11 = arith.addf %10, %9 : vector<1x16xf32>
    %12 = arith.divf %10, %11 : vector<1x16xf32>
    %13 = vector.shape_cast %12 : vector<1x16xf32> to vector<1x16x1xf32>
    %14 = vector.broadcast %13 : vector<1x16x1xf32> to vector<1x16x256xf32>
    %15 = arith.mulf %0, %14 : vector<1x16x256xf32>
    %c0_8 = arith.constant 0 : index
    %c0_9 = arith.constant 0 : index
    %c0_10 = arith.constant 0 : index
    %16 = vector.load %arg3[%c0_8, %c0_9, %c0_10] : memref<1x16x256xf32, #tpu.memory_space<vmem>>, vector<1x16x256xf32>
    tpu.vector_store %arg3[%c0_8, %c0_9, %c0_10], %15 {strides = array<i32>} : memref<1x16x256xf32, #tpu.memory_space<vmem>>, vector<1x16x256xf32>,
    return
  }
  func.func @transform_0(%arg0: i32) -> (i32, i32, i32) {
    %c0_i32 = arith.constant 0 : i32
    %c0_i32_0 = arith.constant 0 : i32
    %c0_i32_1 = arith.constant 0 : i32
    return %arg0, %c0_i32, %c0_i32_0 : i32, i32, i32
  }
  func.func @transform_1(%arg0: i32) -> (i32, i32) {
    %c0_i32 = arith.constant 0 : i32
    %c0_i32_0 = arith.constant 0 : i32
    %c0_i32_1 = arith.constant 0 : i32
    return %c0_i32, %c0_i32_0 : i32, i32
  }
  func.func @transform_2(%arg0: i32) -> (i32, i32, i32) {
    %c0_i32 = arith.constant 0 : i32
    %c0_i32_0 = arith.constant 0 : i32
    %c0_i32_1 = arith.constant 0 : i32
    return %arg0, %c0_i32, %c0_i32_0 : i32, i32, i32
  }
}

</mosaic_0001>

<bundles_post_ra>
// kernel: tpu_custom_call.1
= control target key start
LH: loop header
LB: loop body
LE: loop exit
PB: predicated region body
PF: predicated region fallthrough
CT: control target
= control target key end

     0   :  { %7 = vsyncpa [#allocation3], 0  ;;  %s715_s0 = inlined_call_operand.hbm [shape: f32[2,16,256], index: 0, kind: input, shape index: {}]   ;;  %s716_s1 = inlined_call_operand.vmem [shape: f32[32,16], index: 1, kind: input, shape index: {}]   ;;  %s717_s2 = inlined_call_operand.hbm [shape: f32[2,16,256], index: 2, kind: output, shape index: {}]  }
   0x1   :  { %9 = vsyncpa [#allocation3 + $0x1], 0 }
   0x2   :  { %10 = vsyncpa [#allocation4], 0 }
   0x3   :  { %12 = vsyncpa [#allocation4 + $0x1], 0  ;;  %s552_s9 = smov 0   ;;  %s554_s10 = smov 0  }
   0x4   :  { %s556_s11 = smov 0   ;;  %s558_s12 = smov 0  }
   0x5 LB: > { %s573_s13 = sadd.s32 4294967295, %s531_s12   ;;  %s360_s14 = sadd.s32 4294967294, %s531_s12   ;;  %s531_s12 = sphi %s558_s12, %s727_s12   ;;  %s527_s11 = sphi %s556_s11, %s726_s11   ;;  %s523_s10 = sphi %s554_s10, %s725_s10   ;;  %s519_s9 = sphi %s552_s9, %s724_s9  }
   0x6   : > { %s577_s15 = sadd.s32 1, %s531_s12   ;;  %s25_s16 = sadd.s32 1, %s527_s11 }
   0x7   : > { %s22_s17 = ssub.s32 %s531_s12, %s577_s15  ;;  %p32_p0 = scmp.ne.s32.totalorder %s527_s11, %s523_s10 }
   0x8   : > { %p23_p1 = scmp.eq.s32.totalorder %s22_s17, 0  ;;  %p33_p2 = scmp.eq.s32.totalorder %s531_s12, 0 }
   0x9   : > { %p38_p3 = scmp.ne.s32.totalorder %s523_s10, %s519_s9  ;;  %p39_p4 = scmp.eq.s32.totalorder %s573_s13, 0 }
   0xa   : > { %s589_s18 = scalar_select %p23_p1, %s527_s11, %s25_s16  }
   0xb   : > { %p591_p5 = por %p33_p2, %p32_p0  ;;  %p595_p6 = por %p39_p4, %p38_p3 }
   0xc   : > { %p83_p7 = scmp.eq.s32.totalorder %s573_s13, 1  ;;  %p89_p8 = scmp.eq.s32.totalorder %s360_s14, 1 }
   0xd   : > { %p390_p10 = scmp.lt.s32.totalorder %s531_s12, 2  ;;  %s112_s23 = sand.u32 1, %s527_s11  }
   0xe   : > { %p602_p11 = por %p83_p7, %p32_p0  ;;  %p606_p12 = por %p89_p8, %p38_p3 }
   0xf   : > { %s376_s24 = sshll.u32 %s531_s12, 5  ;;  %s363_s25 = sshll.u32 %s112_s23, 5 }
  0x10   : > { %s121_s28 = scalar_lea.hbm %s715_s0, %s376_s24  ;;  %s116_s30 = scalar_lea.vmem [#allocation2], %s363_s25 }
  0x11   : > { %s122_s29 = sshll.u32 %s121_s28, 4  ;;  %s124_s3 = sshll.u32 %s116_s30, 4  ;;  %s123_s29 = int_to_ptr.hbm [resolvable:$true] %s122_s29  ;;  %s125_s3 = int_to_ptr.vmem [resolvable:$true] %s124_s3 }
  0x12   : > { %p617_p13 = pnand %p390_p10, %p591_p5  ;;  %p366_p0 = scmp.ge.s32.totalorder %s531_s12, 1 }
  0x13   : > { %p132_p1 = scmp.lt.s32.totalorder %s531_s12, 3  ;;  %s113_s5 = scalar_lea.sflag [#allocation3], %s112_s23 }
  0x14   : > { %s435_s6 = sshra.s32 %s123_s29, 4  ;;  %p439_p3 = pneg %p617_p13  ;;  %s436_s6 = int_to_ptr.hbm [resolvable:$true] %s435_s6 }
  0x15   : > { %s437_s7 = scalar_lea.hbm %s436_s6, 32  ;;  %s442_s16 = scalar_lea.hbm %s715_s0, 64 }
  0x16   : > { %p438_p2 = scmp.ne.s32.totalorder %s436_s6, %s437_s7  ;;  %p443_p5 = scmp.lt.s32.totalorder %s436_s6, %s715_s0 }
  0x17   : > { %p444_p8 = scmp.lt.s32.totalorder %s442_s16, %s437_s7 }
  0x18   : > { %p440_p4 = pnand %p439_p3, %p438_p2 }
  0x19   : > { %p445_p10 = por %p444_p8, %p443_p5 }
  0x1a   : > { %p441_p7 = pneg %p440_p4 }
  0x1c   : > { %p446_p9 = pnand %p445_p10, %p441_p7 }
  0x1e   : > { %449 = shalt.err (!%p446_p9)
}
  0x1f   : > { %s533_s23 = smov 256   ;;  %s534_s24 = smov 16  }
  0x20   : > { %385 = dma.hbm_to_vmem [thread:$0]  (!%p617_p13), %s123_s29, 512, %s125_s3, %s113_s5, %s533_s23, %s533_s23, %s534_s24  }
  0x21   : > { %p133_p2 = pnand %p366_p0, %p132_p1 }
  0x22   : > { %s638_s25 = sand.u32 (!%p133_p2), 1, %s523_s10  }
  0x23   : > { %136 = sbr.rel (%p133_p2) target bundleno = 444 (0x1bc), region = 28  ;;  %s367_s26 = sshll.u32 (!%p133_p2), %s638_s25, 5 }
  0x24   : > { %s139_s27 = scalar_lea.sflag (!%p133_p2), [#allocation3], %s638_s25  ;;  %s142_s28 = scalar_lea.vmem (!%p133_p2), [#allocation2], %s367_s26 }
  0x28   : > { %510 = dma.done.wait (%p595_p6), %s139_s27, 512  }
  0x29   : > { %512 = vsyncadd (%p595_p6), %s139_s27, 4294966784  ;;  %v648_v0 = vld [vmem:[%s142_s28] sm:$0xff]  ;;  %v650_v1 = vld [vmem:[%s142_s28 + $0x8] sm:$0xff]  ;;  %v184_v12 = vlaneseq  ;;  %vm189_vm0 = vcmask 130112   ;;  %vm198_vm1 = vcmask 261312   ;;  %vm201_vm2 = vcmask 130048  }
  0x2a   : > { %v174_v2 = vmax.f32 %v648_v0, %v650_v1  ;;  %v168_v3 = vadd.f32 %v650_v1, %v648_v0  ;;  %v656_v4 = vld [vmem:[%s142_s28 + $0x10] sm:$0xff]  ;;  %v658_v5 = vld [vmem:[%s142_s28 + $0x18] sm:$0xff]  ;;  %v204_v10 = vld [vmem:[%s716_s1 + $0x8] sm:$0xff]  ;;  %vm207_vm3 = vcmask 261120   ;;  %s163_s8 = scalar_lea.vmem [#allocation5], %s367_s26  ;;  %s377_s14 = sshll.u32 %s573_s13, 5 }
  0x2b   : > { %v177_v6 = vmax.f32 %v656_v4, %v658_v5  ;;  %v171_v7 = vadd.f32 %v658_v5, %v656_v4  ;;  %v206_v8 = vld [vmem:[%s716_s1 + $0x18] sm:$0xff]  ;;  %v205_v9 = vld [vmem:[%s716_s1 + $0x10] sm:$0xff]  ;;  %v203_v11 = vld [vmem:[%s716_s1] sm:$0xff]  ;;  %v185_v15 = vand.u32 127, %v184_v12  ;;  %v252_v30 = vshrl.u32 %v184_v12, 7  ;;  %s283_s19 = scalar_lea.hbm %s717_s2, %s377_s14  ;;  %s284_s23 = sshll.u32 %s163_s8, 4  ;;  %s285_s23 = int_to_ptr.vmem [resolvable:$true] %s284_s23 }
  0x2c   : > { %175 = vmax.xlane.f32.xlu1 %v174_v2  ;;  %169 = vadd.xlane.f32.xlu0 %v168_v3  ;;  %s286_s24 = sshll.u32 %s283_s19, 4  ;;  %s272_s26 = scalar_lea.sflag [#allocation4], %s638_s25  ;;  %s287_s24 = int_to_ptr.hbm [resolvable:$true] %s286_s24 }
  0x2d   : > { %223 = vmatpush.msra.mxu0 %v206_v8  ;;  %v196_v16 = vadd.s32 4294967272, %v185_v15  ;;  %v194_v17 = vadd.s32 4294967280, %v185_v15  ;;  %v187_v19 = vadd.s32 4294967288, %v185_v15  ;;  %428 = vset.pattern.permute.xlu2 %v252_v30  ;;  %v259_v31 = vadd.s32 8, %v252_v30  ;;  %s479_s27 = sshra.s32 %s287_s24, 4  ;;  %s485_s29 = scalar_lea.hbm %s717_s2, 64  ;;  %s480_s27 = int_to_ptr.hbm [resolvable:$true] %s479_s27 }
  0x2e   : > { %s481_s13 = scalar_lea.hbm %s480_s27, 32  ;;  %p486_p0 = scmp.lt.s32.totalorder %s480_s27, %s717_s2 }
  0x2f   : > { %224 = vmatpush.msra.mxu0 %v205_v9  ;;  %430 = vset.pattern.permute.xlu0 %v259_v31  ;;  %p482_p6 = scmp.ne.s32.totalorder %s480_s27, %s481_s13  ;;  %p487_p1 = scmp.lt.s32.totalorder %s485_s29, %s481_s13 }
  0x31   : > { %225 = vmatpush.msra.mxu0 %v204_v10  ;;  %p483_p9 = pnand %p482_p6, %p602_p11  ;;  %p488_p3 = por %p487_p1, %p486_p0 }
  0x33   : > { %226 = vmatpush.msra.mxu0 %v203_v11  ;;  %p484_p13 = pneg %p483_p9 }
  0x34   : > { %178 = vmax.xlane.f32.xlu1 %v177_v6  ;;  %172 = vadd.xlane.f32.xlu0 %v171_v7 }
  0x35   : > { %p489_p4 = pnand %p488_p3, %p484_p13 }
  0x9f   : > { %v176_v13 = vpop.xlane.xlu1 %175  ;;  %v170_v14 = vpop.xlane.xlu0 %169 }
  0xa0   : > { %v180_v18 = vmul.f32 0.00390625, %v170_v14  ;;  %v195_v24 = vperm.slane %v176_v13, %v194_v17 }
  0xa2   : > { %v186_v25 = vperm.slane %v180_v18, %v185_v15 }
  0xa7   : > { %v179_v20 = vpop.xlane.xlu1 %178  ;;  %v173_v21 = vpop.xlane.xlu0 %172 }
  0xa8   : > { %v197_v22 = vperm.slane %v179_v20, %v196_v16  ;;  %v181_v23 = vmul.f32 0.00390625, %v173_v21 }
  0xaa   : > { %v188_v26 = vperm.slane %v181_v23, %v187_v19  ;;  %v199_v28 = vsel %vm198_vm1, %v197_v22, %v195_v24 }
  0xac   : > { %v190_v27 = vsel %vm189_vm0, %v188_v26, %v186_v25 }
  0xad   : > { %v202_v29 = vsel %vm201_vm2, %v190_v27, %v199_v28 }
  0xae   : > { %369 = vmatmul.msk.f32.vlgmr.msra.gmra.mxu0 %vm207_vm3, %v202_v29 }
 0x12b   : > { %v228_v32 = vpop.f32.mrf.mxu0 }
 0x12c   : > { %v370_v33 = vmul.f32 -1.442695, %v228_v32 }
 0x12e   : > { %431 = vpow2.f32 %v370_v33 }
 0x134   : > { %v432_v34 = vpop.eup %431 }
 0x135   : > { %v234_v35 = vadd.f32 1.0, %v432_v34 }
 0x137   : > { %433 = vrcp.f32 %v234_v35  ;;  %v246_v39 = vand.u32 2147483648, %v234_v35  ;;  %v244_v41 = vand.u32 2147483647, %v234_v35  ;;  %vm240_vm5 = vweird.f32 %v234_v35 }
 0x139   : > { %v247_v43 = vor.u32 1.1754944e-38, %v246_v39  ;;  %vm245_vm7 = vcmp.eq.f32.partialorder %v244_v41, 8.507059e+37 }
 0x13d   : > { %v434_v36 = vpop.eup %433 }
 0x13e   : > { %v236_v37 = vmul.f32 %v434_v36, %v234_v35  ;;  %vm241_vm4 = vweird.f32 %v434_v36 }
 0x13f   : > { %vm242_vm6 = vmor %vm240_vm5, %vm241_vm4 }
 0x140   : > { %v237_v38 = vsub.f32 1.0, %v236_v37 }
 0x142   : > { %v238_v40 = vmul.f32 %v434_v36, %v237_v38 }
 0x144   : > { %v239_v42 = vadd.f32 %v434_v36, %v238_v40 }
 0x146   : > { %v243_v44 = vsel %vm242_vm6, %v434_v36, %v239_v42 }
 0x147   : > { %v248_v45 = vsel %vm245_vm7, %v247_v43, %v243_v44 }
 0x148   : > { %v250_v46 = vperm.slane %v248_v45, 0 }
 0x14a   : > { %255 = vperm.xlu2 %428, %v250_v46  }
 0x152   : > { %429 = vset.pattern.permute.xlu2 %v259_v31 }
 0x15a   : > { %261 = vperm.xlu2 %429, %v250_v46  }
 0x1a4   : > { %v256_v47 = vpop.permute.xlu2 %255 }
 0x1a5   : > { %v263_v48 = vmul.f32 %v256_v47, %v648_v0  ;;  %v264_v49 = vmul.f32 %v256_v47, %v650_v1 }
 0x1a7   : > { %267 = vst [vmem:[%s163_s8] sm:$0xff] %v263_v48 }
 0x1a8   : > { %268 = vst [vmem:[%s163_s8 + $0x8] sm:$0xff] %v264_v49 }
 0x1b4   : > { %v262_v50 = vpop.permute.xlu2 %261 }
 0x1b5   : > { %v265_v51 = vmul.f32 %v262_v50, %v656_v4  ;;  %v266_v52 = vmul.f32 %v262_v50, %v658_v5 }
 0x1b7   : > { %269 = vst [vmem:[%s163_s8 + $0x10] sm:$0xff] %v265_v51 }
 0x1b8   : > { %270 = vst [vmem:[%s163_s8 + $0x18] sm:$0xff] %v266_v52 }
 0x1b9   : > { %492 = shalt.err (!%p489_p4)
}
 0x1ba   : > { %s535_s25 = smov 256   ;;  %s536_s4 = smov 16  }
 0x1bb   : > { %380 = dma.vmem_to_hbm [thread:$0]  (%p602_p11), %s285_s23, 512, %s287_s24, %s272_s26, %s535_s25, %s535_s25, %s536_s4  }
 0x1bc PF: > { %s301_s5 = sand.u32 1, %s519_s9   ;;  %p723_p7 = scmp.ge.s32.totalorder %s531_s12, 2 }
 0x1bd   : > { %s302_s6 = scalar_lea.sflag [#allocation4], %s301_s5 }
 0x1be   : > { %p387_p5 = pnand %p723_p7, %p606_p12 }
 0x1c0   : > { %p388_p8 = pneg %p387_p5 }
 0x1c2   : > { %514 = dma.done.wait (%p388_p8), %s302_s6, 512  }
 0x1c3   : > { %516 = vsyncadd (%p388_p8), %s302_s6, 4294966784  ;;  %p15_p10 = scmp.ge.s32.totalorder %s577_s15, 4   ;;  %s724_s9 = smov %s523_s10 }
 0x1c4   : > { %s725_s10 = smov %s527_s11  ;;  %s726_s11 = smov %s589_s18 }
 0x1c5   : > { %s727_s12 = smov %s577_s15  ;;  %17 = sbr.rel (!%p15_p10) target bundleno = 5 (0x5), region = 73 }
 0x1ca   :  { %308 = vsyncpa [#allocation3], 1 }
 0x1cb   :  { %310 = vsyncpa [#allocation3 + $0x1], 1 }
 0x1cc   :  { %311 = vsyncpa [#allocation4], 1 }
 0x1cd   :  { %313 = vsyncpa [#allocation4 + $0x1], 1 }

</bundles_post_ra>
